<compile_context>
chip_gen: v5e
topology: v5e:2x2
jax: 0.10.0
libtpu: 0.0.40
codegen_flags: <defaults>
</compile_context>

<pallas_src>
import functools
import math

import jax
import jax.numpy as jnp
from jax import lax
from jax.experimental import pallas as pl
from jax.experimental.pallas import tpu as pltpu


def _flash_attention_kernel(q_ref, k_ref, v_ref, o_ref,
                            qs_sc, m_sc, l_sc, acc_sc, *, inv_scale):
    """One (batch, q-block, kv-block) grid step.

    q_ref: (1, tq, D); k_ref/v_ref: (1, tk, D); o_ref: (1, tq, D)
    qs_sc: (tq, D) scaled-Q cache (input dtype)
    m_sc/l_sc: (tq, 1) f32 running max / denominator; acc_sc: (tq, D) f32.
    """
    kv = pl.program_id(2)

    @pl.when(kv == 0)
    def _():
        # Per-(batch, q-block) init.  Scaling Q here (instead of every kv step)
        # removes tq*D VPU multiplies per step -- free win, biggest on v5e.
        qs_sc[...] = q_ref[0] * inv_scale
        m_sc[...] = jnp.full_like(m_sc, -jnp.inf)
        l_sc[...] = jnp.zeros_like(l_sc)
        acc_sc[...] = jnp.zeros_like(acc_sc)

    q = qs_sc[...]          # already scaled, native dtype (bf16 stays bf16)
    k = k_ref[0]
    v = v_ref[0]

    # s = Q @ K^T without materializing K^T: contract the feature axis of both.
    s = lax.dot_general(q, k,
                        dimension_numbers=(((1,), (1,)), ((), ())),
                        preferred_element_type=jnp.float32)       # (tq, tk) f32

    # Online softmax update (statistics kept in f32).
    m_prev = m_sc[...]
    m_new = jnp.maximum(m_prev, jnp.max(s, axis=-1, keepdims=True))
    alpha = jnp.exp(m_prev - m_new)
    p = jnp.exp(s - m_new)
    l_sc[...] = alpha * l_sc[...] + jnp.sum(p, axis=-1, keepdims=True)
    acc_sc[...] = alpha * acc_sc[...] + jnp.dot(
        p.astype(v.dtype), v, preferred_element_type=jnp.float32)
    m_sc[...] = m_new

    # dropout (eval mode) == identity

    @pl.when(kv == pl.num_programs(2) - 1)
    def _():
        # Approximate reciprocal runs on the EUP slot, off the VALU path.
        inv_l = pl.reciprocal(l_sc[...], approx=True)
        o_ref[0] = (acc_sc[...] * inv_l).astype(o_ref.dtype)


# Conservative VMEM budget for tile selection: comfortably under the 48 MiB
# limit we pass to the compiler, which itself fits v7x's 64 MiB physical VMEM.
_VMEM_TILE_BUDGET = 40 * 1024 * 1024


def _block_vmem_bytes(tq, tk, D, itemsize):
    """Rough per-grid-step VMEM footprint for tiles (tq, tk)."""
    # Double-buffered Q/K/V/O blocks streamed by the BlockSpec pipeline.
    io = 2 * (tq * D + 2 * tk * D + tq * D) * itemsize
    # Scratch: f32 acc, (tq,1) m/l (lanes pad to 128), scaled-Q copy.
    scratch = (tq * D) * 4 + 2 * (tq * 128) * 4 + tq * D * itemsize
    # Live intermediates inside the body: s, p (f32) + p cast to input dtype.
    inter = 2 * (tq * tk) * 4 + tq * tk * itemsize
    return io + scratch + inter


def _pick_tiles(T_q, T_k, D, itemsize, N):
    """Largest MXU-friendly tiles that divide the axes and fit the VMEM budget.

    Big tq is preferred (K/V re-stream per q-block scales as 1/tq); tk mainly
    amortizes the per-grid-step pipeline overhead.
    """
    q_cands = [c for c in (1024, 768, 512, 384, 256, 128)
               if c <= T_q and T_q % c == 0]
    k_cands = [c for c in (512, 384, 256, 128)
               if c <= T_k and T_k % c == 0]
    if not q_cands:
        q_cands = [T_q]     # small / irregular sequence: whole axis as one block
    if not k_cands:
        k_cands = [T_k]

    tq, tk = q_cands[-1], k_cands[-1]          # smallest pair as fallback
    for cq in q_cands:                         # prefer biggest tq, then tk
        for ck in k_cands:
            if _block_vmem_bytes(cq, ck, D, itemsize) <= _VMEM_TILE_BUDGET:
                tq, tk = cq, ck
                break
        else:
            continue
        break

    # Keep at least 2 units of "parallel" grid work so both TensorCores on a
    # v7x chip get sharded work via dimension_semantics.
    while N * (T_q // tq) < 2:
        smaller = [c for c in q_cands if c < tq]
        if not smaller:
            break
        tq = smaller[0]
    return tq, tk


def attention(Q, K, V, dk, drop_p=0.0, *, cast_to_bf16=False):
    """Pallas flash-attention equivalent of Attention.forward (eval mode).

    Q: [N, T_q, d_model], K/V: [N, T_k, d_model] -> [N, T_q, d_model]

    cast_to_bf16: if True and inputs are f32, run the two matmuls in bf16
    (f32 accumulation and f32 softmax statistics).  ~3x MXU throughput and
    half the K/V HBM traffic, at the standard flash-attention precision cost.
    """
    del drop_p  # nn.Dropout is identity in eval mode

    if cast_to_bf16 and Q.dtype == jnp.float32:
        Q = Q.astype(jnp.bfloat16)
        K = K.astype(jnp.bfloat16)
        V = V.astype(jnp.bfloat16)

    N, T_q, D = Q.shape
    _, T_k, _ = K.shape
    inv_scale = 1.0 / math.sqrt(dk)
    itemsize = jnp.dtype(Q.dtype).itemsize

    tq, tk = _pick_tiles(T_q, T_k, D, itemsize, N)
    n_q_blocks = T_q // tq
    n_k_blocks = T_k // tk

    kernel = functools.partial(_flash_attention_kernel, inv_scale=inv_scale)

    # True HBM traffic: Q read once, O written once, K/V re-streamed once per
    # q-block (n_q_blocks times).
    cost = pl.CostEstimate(
        flops=4 * N * T_q * T_k * D,                 # QK^T + PV
        transcendentals=N * T_q * T_k,               # exp
        bytes_accessed=(Q.size + N * T_q * D
                        + n_q_blocks * (K.size + V.size)) * itemsize,
    )

    # Derive the VMEM limit from the footprint; cap at 48 MiB (v7x-safe).
    vmem_limit = int(min(48 * 1024 * 1024,
                         max(32 * 1024 * 1024,
                             2 * _block_vmem_bytes(tq, tk, D, itemsize))))

    return pl.pallas_call(
        kernel,
        out_shape=jax.ShapeDtypeStruct((N, T_q, D), Q.dtype),
        grid_spec=pltpu.PrefetchScalarGridSpec(
            num_scalar_prefetch=0,
            grid=(N, n_q_blocks, n_k_blocks),
            in_specs=[
                pl.BlockSpec((1, tq, D), lambda b, qi, ki: (b, qi, 0)),
                pl.BlockSpec((1, tk, D), lambda b, qi, ki: (b, ki, 0)),
                pl.BlockSpec((1, tk, D), lambda b, qi, ki: (b, ki, 0)),
            ],
            # Output block constant across the kv axis -> accumulator resident,
            # written back to HBM only after the last kv step.
            out_specs=pl.BlockSpec((1, tq, D), lambda b, qi, ki: (b, qi, 0)),
            scratch_shapes=[
                pltpu.VMEM((tq, D), Q.dtype),        # scaled Q (hoisted)
                pltpu.VMEM((tq, 1), jnp.float32),    # running max
                pltpu.VMEM((tq, 1), jnp.float32),    # running denominator
                pltpu.VMEM((tq, D), jnp.float32),    # output accumulator
            ],
        ),
        compiler_params=pltpu.CompilerParams(
            dimension_semantics=("parallel", "parallel", "arbitrary"),
            vmem_limit_bytes=vmem_limit,
        ),
        cost_estimate=cost,
    )(Q, K, V)


def _reference(Q, K, V, dk):
    s = jnp.matmul(Q, jnp.swapaxes(K, -2, -1)) / math.sqrt(dk)
    p = jax.nn.softmax(s, axis=-1)
    return jnp.matmul(p, V)


if __name__ == "__main__":
    key = jax.random.PRNGKey(0)
    kq, kk, kv = jax.random.split(key, 3)

    # Small shapes matching the module's interface (single-block path).
    N, T_q, T_k, d_model = 2, 8, 8, 32
    dk = d_model
    drop_p = 0.1  # inactive in eval mode

    Q = jax.random.normal(kq, (N, T_q, d_model), dtype=jnp.float32)
    K = jax.random.normal(kk, (N, T_k, d_model), dtype=jnp.float32)
    V = jax.random.normal(kv, (N, T_k, d_model), dtype=jnp.float32)

    out = jax.block_until_ready(attention(Q, K, V, dk, drop_p))
    ref = _reference(Q, K, V, dk)
    assert out.shape == (N, T_q, d_model)
    assert jnp.allclose(out, ref, atol=2e-3, rtol=2e-3), "mismatch (small)"

    # Larger shape exercising the tiled flash path (full-precision f32 path).
    N2, T2, D2 = 2, 512, 128
    k2q, k2k, k2v = jax.random.split(jax.random.PRNGKey(1), 3)
    Q2 = jax.random.normal(k2q, (N2, T2, D2), dtype=jnp.float32)
    K2 = jax.random.normal(k2k, (N2, T2, D2), dtype=jnp.float32)
    V2 = jax.random.normal(k2v, (N2, T2, D2), dtype=jnp.float32)

    out2 = jax.block_until_ready(attention(Q2, K2, V2, D2))
    ref2 = _reference(Q2, K2, V2, D2)
    assert jnp.allclose(out2, ref2, atol=2e-3, rtol=2e-3), "mismatch (tiled)"

    # Same shapes through the bf16-matmul fast path (looser tolerance: the
    # matmuls round to bf16, standard flash-attention precision tradeoff).
    out3 = jax.block_until_ready(attention(Q2, K2, V2, D2, cast_to_bf16=True))
    ref3 = _reference(Q2.astype(jnp.bfloat16).astype(jnp.float32),
                      K2.astype(jnp.bfloat16).astype(jnp.float32),
                      V2.astype(jnp.bfloat16).astype(jnp.float32), D2)
    assert jnp.allclose(out3.astype(jnp.float32), ref3, atol=5e-2, rtol=5e-2), \
        "mismatch (bf16 path)"

    print("KERNEL_OK")
</pallas_src>

<mosaic_0001>
module attributes {stable_mosaic.version = 11 : i64} {
  func.func @_flash_attention_kernel(%arg0: i32, %arg1: i32, %arg2: i32, %arg3: memref<1x8x32xf32, #tpu.memory_space<vmem>>, %arg4: memref<1x8x32xf32, #tpu.memory_space<vmem>>, %arg5: memref<1x8x32xf32, #tpu.memory_space<vmem>>, %arg6: memref<1x8x32xf32, #tpu.memory_space<vmem>>, %arg7: memref<8x32xf32, #tpu.memory_space<vmem>>, %arg8: memref<8x1xf32, #tpu.memory_space<vmem>>, %arg9: memref<8x1xf32, #tpu.memory_space<vmem>>, %arg10: memref<8x32xf32, #tpu.memory_space<vmem>>) attributes {dimension_semantics = [#tpu.dimension_semantics<parallel>, #tpu.dimension_semantics<parallel>, #tpu.dimension_semantics<arbitrary>], iteration_bounds = array<i64: 2, 1, 1>, scalar_prefetch = 0 : i64, scratch_operands = 4 : i64, tpu.core_type = #tpu.core_type<tc>, window_params = [{transform_indices = @transform_0, window_bounds = array<i64: 1, 8, 32>}, {transform_indices = @transform_1, window_bounds = array<i64: 1, 8, 32>}, {transform_indices = @transform_2, window_bounds = array<i64: 1, 8, 32>}, {transform_indices = @transform_3, window_bounds = array<i64: 1, 8, 32>}]} {
    %c0_i32 = arith.constant 0 : i32
    %0 = arith.cmpi eq, %arg2, %c0_i32 : i32
    %1 = arith.extui %0 : i1 to i32
    %c0_i32_0 = arith.constant 0 : i32
    %2 = arith.cmpi ne, %1, %c0_i32_0 : i32
    scf.if %2 {
      %c0_25 = arith.constant 0 : index
      %c0_26 = arith.constant 0 : index
      %c0_27 = arith.constant 0 : index
      %34 = vector.load %arg3[%c0_25, %c0_26, %c0_27] : memref<1x8x32xf32, #tpu.memory_space<vmem>>, vector<1x8x32xf32>
      %35 = vector.shape_cast %34 : vector<1x8x32xf32> to vector<8x32xf32>
      %cst_28 = arith.constant 0.176776692 : f32
      %36 = vector.broadcast %cst_28 : f32 to vector<8x32xf32>
      %37 = arith.mulf %35, %36 : vector<8x32xf32>
      %c0_29 = arith.constant 0 : index
      %c0_30 = arith.constant 0 : index
      %38 = vector.load %arg7[%c0_29, %c0_30] : memref<8x32xf32, #tpu.memory_space<vmem>>, vector<8x32xf32>
      tpu.vector_store %arg7[%c0_29, %c0_30], %37 {strides = array<i32>} : memref<8x32xf32, #tpu.memory_space<vmem>>, vector<8x32xf32>,
      %cst_31 = arith.constant 0xFF800000 : f32
      %39 = vector.broadcast %cst_31 : f32 to vector<8x1xf32>
      %c0_32 = arith.constant 0 : index
      %c0_33 = arith.constant 0 : index
      %40 = vector.load %arg8[%c0_32, %c0_33] : memref<8x1xf32, #tpu.memory_space<vmem>>, vector<8x1xf32>
      tpu.vector_store %arg8[%c0_32, %c0_33], %39 {strides = array<i32>} : memref<8x1xf32, #tpu.memory_space<vmem>>, vector<8x1xf32>,
      %cst_34 = arith.constant 0.000000e+00 : f32
      %41 = vector.broadcast %cst_34 : f32 to vector<8x1xf32>
      %c0_35 = arith.constant 0 : index
      %c0_36 = arith.constant 0 : index
      %42 = vector.load %arg9[%c0_35, %c0_36] : memref<8x1xf32, #tpu.memory_space<vmem>>, vector<8x1xf32>
      tpu.vector_store %arg9[%c0_35, %c0_36], %41 {strides = array<i32>} : memref<8x1xf32, #tpu.memory_space<vmem>>, vector<8x1xf32>,
      %cst_37 = arith.constant 0.000000e+00 : f32
      %43 = vector.broadcast %cst_37 : f32 to vector<8x32xf32>
      %c0_38 = arith.constant 0 : index
      %c0_39 = arith.constant 0 : index
      %44 = vector.load %arg10[%c0_38, %c0_39] : memref<8x32xf32, #tpu.memory_space<vmem>>, vector<8x32xf32>
      tpu.vector_store %arg10[%c0_38, %c0_39], %43 {strides = array<i32>} : memref<8x32xf32, #tpu.memory_space<vmem>>, vector<8x32xf32>,
    } else {
    }
    %c0 = arith.constant 0 : index
    %c0_1 = arith.constant 0 : index
    %3 = vector.load %arg7[%c0, %c0_1] : memref<8x32xf32, #tpu.memory_space<vmem>>, vector<8x32xf32>
    %c0_2 = arith.constant 0 : index
    %c0_3 = arith.constant 0 : index
    %c0_4 = arith.constant 0 : index
    %4 = vector.load %arg4[%c0_2, %c0_3, %c0_4] : memref<1x8x32xf32, #tpu.memory_space<vmem>>, vector<1x8x32xf32>
    %5 = vector.shape_cast %4 : vector<1x8x32xf32> to vector<8x32xf32>
    %c0_5 = arith.constant 0 : index
    %c0_6 = arith.constant 0 : index
    %c0_7 = arith.constant 0 : index
    %6 = vector.load %arg5[%c0_5, %c0_6, %c0_7] : memref<1x8x32xf32, #tpu.memory_space<vmem>>, vector<1x8x32xf32>
    %7 = vector.shape_cast %6 : vector<1x8x32xf32> to vector<8x32xf32>
    %cst = arith.constant dense<0.000000e+00> : vector<8x8xf32>
    %8 = tpu.matmul %3, %5, %cst {dimension_numbers = #tpu.dot_dimension_numbers<[1], [1], [0], [0], [0, 0, 1, 0], [], []>} : vector<8x32xf32>, vector<8x32xf32>, vector<8x8xf32> -> vector<8x8xf32>
    %c0_8 = arith.constant 0 : index
    %c0_9 = arith.constant 0 : index
    %9 = vector.load %arg8[%c0_8, %c0_9] : memref<8x1xf32, #tpu.memory_space<vmem>>, vector<8x1xf32>
    %cst_10 = arith.constant dense<0xFF800000> : vector<8xf32>
    %10 = vector.multi_reduction <maximumf>, %8, %cst_10 [1] : vector<8x8xf32> to vector<8xf32>
    %11 = vector.shape_cast %10 : vector<8xf32> to vector<8x1xf32>
    %12 = arith.maximumf %9, %11 : vector<8x1xf32>
    %13 = arith.subf %9, %12 : vector<8x1xf32>
    %14 = math.exp %13 : vector<8x1xf32>
    %15 = vector.broadcast %12 : vector<8x1xf32> to vector<8x8xf32>
    %16 = arith.subf %8, %15 : vector<8x8xf32>
    %17 = math.exp %16 : vector<8x8xf32>
    %c0_11 = arith.constant 0 : index
    %c0_12 = arith.constant 0 : index
    %18 = vector.load %arg9[%c0_11, %c0_12] : memref<8x1xf32, #tpu.memory_space<vmem>>, vector<8x1xf32>
    %19 = arith.mulf %14, %18 : vector<8x1xf32>
    %cst_13 = arith.constant dense<0.000000e+00> : vector<8xf32>
    %20 = vector.multi_reduction <add>, %17, %cst_13 [1] : vector<8x8xf32> to vector<8xf32>
    %21 = vector.shape_cast %20 : vector<8xf32> to vector<8x1xf32>
    %22 = arith.addf %19, %21 : vector<8x1xf32>
    %c0_14 = arith.constant 0 : index
    %c0_15 = arith.constant 0 : index
    %23 = vector.load %arg9[%c0_14, %c0_15] : memref<8x1xf32, #tpu.memory_space<vmem>>, vector<8x1xf32>
    tpu.vector_store %arg9[%c0_14, %c0_15], %22 {strides = array<i32>} : memref<8x1xf32, #tpu.memory_space<vmem>>, vector<8x1xf32>,
    %c0_16 = arith.constant 0 : index
    %c0_17 = arith.constant 0 : index
    %24 = vector.load %arg10[%c0_16, %c0_17] : memref<8x32xf32, #tpu.memory_space<vmem>>, vector<8x32xf32>
    %25 = vector.broadcast %14 : vector<8x1xf32> to vector<8x32xf32>
    %26 = arith.mulf %25, %24 : vector<8x32xf32>
    %cst_18 = arith.constant dense<0.000000e+00> : vector<8x32xf32>
    %27 = tpu.matmul %17, %7, %cst_18 {dimension_numbers = #tpu.dot_dimension_numbers<[1], [0], [0], [1], [0, 0, 1, 1], [], []>} : vector<8x8xf32>, vector<8x32xf32>, vector<8x32xf32> -> vector<8x32xf32>
    %28 = arith.addf %26, %27 : vector<8x32xf32>
    %c0_19 = arith.constant 0 : index
    %c0_20 = arith.constant 0 : index
    %29 = vector.load %arg10[%c0_19, %c0_20] : memref<8x32xf32, #tpu.memory_space<vmem>>, vector<8x32xf32>
    tpu.vector_store %arg10[%c0_19, %c0_20], %28 {strides = array<i32>} : memref<8x32xf32, #tpu.memory_space<vmem>>, vector<8x32xf32>,
    %c0_21 = arith.constant 0 : index
    %c0_22 = arith.constant 0 : index
    %30 = vector.load %arg8[%c0_21, %c0_22] : memref<8x1xf32, #tpu.memory_space<vmem>>, vector<8x1xf32>
    tpu.vector_store %arg8[%c0_21, %c0_22], %12 {strides = array<i32>} : memref<8x1xf32, #tpu.memory_space<vmem>>, vector<8x1xf32>,
    %c0_i32_23 = arith.constant 0 : i32
    %31 = arith.cmpi eq, %arg2, %c0_i32_23 : i32
    %32 = arith.extui %31 : i1 to i32
    %c0_i32_24 = arith.constant 0 : i32
    %33 = arith.cmpi ne, %32, %c0_i32_24 : i32
    scf.if %33 {
      %c0_25 = arith.constant 0 : index
      %c0_26 = arith.constant 0 : index
      %34 = vector.load %arg9[%c0_25, %c0_26] : memref<8x1xf32, #tpu.memory_space<vmem>>, vector<8x1xf32>
      %35 = tpu.reciprocal %34 {approx = true} : vector<8x1xf32> -> vector<8x1xf32>
      %c0_27 = arith.constant 0 : index
      %c0_28 = arith.constant 0 : index
      %36 = vector.load %arg10[%c0_27, %c0_28] : memref<8x32xf32, #tpu.memory_space<vmem>>, vector<8x32xf32>
      %37 = vector.broadcast %35 : vector<8x1xf32> to vector<8x32xf32>
      %38 = arith.mulf %36, %37 : vector<8x32xf32>
      %c0_29 = arith.constant 0 : index
      %c0_30 = arith.constant 0 : index
      %c0_31 = arith.constant 0 : index
      %39 = vector.load %arg6[%c0_29, %c0_30, %c0_31] : memref<1x8x32xf32, #tpu.memory_space<vmem>>, vector<1x8x32xf32>
      %40 = vector.shape_cast %39 : vector<1x8x32xf32> to vector<8x32xf32>
      %41 = vector.shape_cast %38 : vector<8x32xf32> to vector<1x8x32xf32>
      tpu.vector_store %arg6[%c0_29, %c0_30, %c0_31], %41 {strides = array<i32>} : memref<1x8x32xf32, #tpu.memory_space<vmem>>, vector<1x8x32xf32>,
    } else {
    }
    return
  }
  func.func @transform_0(%arg0: i32, %arg1: i32, %arg2: i32) -> (i32, i32, i32) {
    %c0_i32 = arith.constant 0 : i32
    %c0_i32_0 = arith.constant 0 : i32
    return %arg0, %arg1, %c0_i32 : i32, i32, i32
  }
  func.func @transform_1(%arg0: i32, %arg1: i32, %arg2: i32) -> (i32, i32, i32) {
    %c0_i32 = arith.constant 0 : i32
    %c0_i32_0 = arith.constant 0 : i32
    return %arg0, %arg2, %c0_i32 : i32, i32, i32
  }
  func.func @transform_2(%arg0: i32, %arg1: i32, %arg2: i32) -> (i32, i32, i32) {
    %c0_i32 = arith.constant 0 : i32
    %c0_i32_0 = arith.constant 0 : i32
    return %arg0, %arg2, %c0_i32 : i32, i32, i32
  }
  func.func @transform_3(%arg0: i32, %arg1: i32, %arg2: i32) -> (i32, i32, i32) {
    %c0_i32 = arith.constant 0 : i32
    %c0_i32_0 = arith.constant 0 : i32
    return %arg0, %arg1, %c0_i32 : i32, i32, i32
  }
}

</mosaic_0001>

<bundles_post_ra>
// kernel: tpu_custom_call.1
= control target key start
LH: loop header
LB: loop body
LE: loop exit
PB: predicated region body
PF: predicated region fallthrough
CT: control target
= control target key end

     0   :  { %s1029_s0 = inlined_call_operand.hbm [shape: f32[2,8,32], index: 0, kind: input, shape index: {}]   ;;  %s1030_s1 = inlined_call_operand.hbm [shape: f32[2,8,32], index: 1, kind: input, shape index: {}]   ;;  %s1031_s2 = inlined_call_operand.hbm [shape: f32[2,8,32], index: 2, kind: input, shape index: {}]   ;;  %s1032_s3 = inlined_call_operand.hbm [shape: f32[2,8,32], index: 3, kind: output, shape index: {}]  }
   0x1   :  { %1035 = sst [smem:[#allocation19_spill]] %s1030_s1 }
   0x2   :  { %8 = vsyncpa [#allocation7], 0 }
   0x3   :  { %10 = vsyncpa [#allocation7 + $0x1], 0 }
   0x4   :  { %11 = vsyncpa [#allocation10], 0 }
   0x5   :  { %13 = vsyncpa [#allocation10 + $0x1], 0 }
   0x6   :  { %14 = vsyncpa [#allocation8], 0 }
   0x7   :  { %16 = vsyncpa [#allocation8 + $0x1], 0  ;;  %s858_s12 = smov 0   ;;  %s860_s13 = smov 0  }
   0x8   :  { %s862_s14 = smov 0   ;;  %s864_s15 = smov 0  }
   0x9   :  { %s866_s16 = smov 0   ;;  %s868_s17 = smov 0  }
   0xa LB: > { %1036 = sst [smem:[#allocation16_spill]] %s829_s16  ;;  %s889_s18 = sadd.s32 4294967295, %s833_s17   ;;  %s833_s17 = sphi %s868_s17, %s22_s17   ;;  %s829_s16 = sphi %s866_s16, %s1048_s16   ;;  %s825_s15 = sphi %s864_s15, %s1047_s15   ;;  %s821_s14 = sphi %s862_s14, %s1051_s14   ;;  %s817_s13 = sphi %s860_s13, %s1050_s13   ;;  %s813_s12 = sphi %s858_s12, %s1049_s12  }
   0xb   : > { %s552_s19 = sadd.s32 4294967294, %s833_s17   ;;  %s41_s20 = sadd.s32 1, %s829_s16 }
   0xc   : > { %s50_s21 = sadd.s32 1, %s821_s14  ;;  %p43_p0 = scmp.ge.s32.totalorder %s41_s20, 2 }
   0xd   : > { %p57_p1 = scmp.ne.s32.totalorder %s821_s14, %s817_s13  ;;  %p58_p2 = scmp.eq.s32.totalorder %s833_s17, 0 }
   0xe   : > { %p63_p3 = scmp.ne.s32.totalorder %s817_s13, %s813_s12  ;;  %s1053_s20 = smov (%p43_p0, %s41_s20), 0 }
   0xf   : > { %1037 = sst [smem:[#allocation17_spill]] %s1053_s20  ;;  %p901_p4 = por %p58_p2, %p57_p1 }
  0x10   : > { %p64_p5 = scmp.eq.s32.totalorder %s889_s18, 0  ;;  %s45_s23 = ssub.s32 %s829_s16, %s1053_s20 }
  0x11   : > { %p145_p6 = scmp.eq.s32.totalorder %s889_s18, 1  ;;  %p48_p7 = scmp.eq.s32.totalorder %s45_s23, 0 }
  0x12   : > { %p909_p8 = por %p64_p5, %p63_p3  ;;  %p151_p10 = scmp.eq.s32.totalorder %s552_s19, 1 }
  0x13   : > { %p913_p9 = por %p145_p6, %p57_p1  ;;  %p554_p12 = scmp.ge.s32.totalorder %s833_s17, 2 }
  0x14   : > { %s918_s26 = scalar_select %p48_p7, %s821_s14, %s50_s21  }
  0x15   : > { %p920_p11 = por %p151_p10, %p63_p3  ;;  %p595_p13 = scmp.lt.s32.totalorder %s833_s17, 2 }
  0x16   : > { %1041 = sst [smem:[#allocation18_spill]] %s918_s26  ;;  %s171_s28 = sand.u32 1, %s821_s14  }
  0x17   : > { %s555_s29 = sshll.u32 %s171_s28, 3  ;;  %s556_s30 = sshll.u32 %s829_s16, 3 }
  0x18   : > { %p930_p0 = pnand %p595_p13, %p901_p4  ;;  %s191_s5 = sand.u32 1, %s833_s17  }
  0x19   : > { %s1044_s1 = sld [smem:[#allocation19_spill]]  ;;  %s195_s10 = scalar_lea.vmem [#allocation9], %s555_s29 }
  0x1a   : > { %s204_s11 = sshll.u32 %s195_s10, 4  ;;  %s192_s19 = scalar_lea.sflag [#allocation10], %s191_s5  ;;  %s205_s11 = int_to_ptr.vmem [resolvable:$true] %s204_s11 }
  0x1b   : > { %p561_p1 = scmp.ge.s32.totalorder %s833_s17, 1  ;;  %p229_p2 = scmp.lt.s32.totalorder %s833_s17, 3 }
  0x1c   : > { %s180_s6 = scalar_lea.hbm %s1029_s0, %s556_s30  ;;  %s172_s10 = scalar_lea.sflag [#allocation7], %s171_s28 }
  0x1d   : > { %p942_p3 = pnand %p561_p1, %p229_p2  ;;  %s182_s7 = sshll.u32 %s180_s6, 4  ;;  %s183_s7 = int_to_ptr.hbm [resolvable:$true] %s182_s7 }
  0x1e   : > { %s215_s16 = scalar_lea.vmem [#allocation11], %s555_s29  ;;  %s959_s22 = sand.u32 (!%p942_p3), 1, %s817_s13  }
  0x1f   : > { %s200_s8 = scalar_lea.hbm %s1044_s1, %s556_s30  ;;  %s224_s26 = sshll.u32 %s215_s16, 4  ;;  %s225_s26 = int_to_ptr.vmem [resolvable:$true] %s224_s26 }
  0x20   : > { %s202_s9 = sshll.u32 %s200_s8, 4  ;;  %s175_s8 = scalar_lea.vmem [#allocation6], %s555_s29  ;;  %s203_s9 = int_to_ptr.hbm [resolvable:$true] %s202_s9 }
  0x21   : > { %587 = dma.hbm_to_vmem [thread:$0]  (!%p930_p0), %s203_s9, 128, %s205_s11, %s192_s19  }
  0x22   : > { %s184_s1 = sshll.u32 %s175_s8, 4  ;;  %s220_s11 = scalar_lea.hbm %s1031_s2, %s556_s30  ;;  %s185_s1 = int_to_ptr.vmem [resolvable:$true] %s184_s1 }
  0x23   : > { %584 = dma.hbm_to_vmem [thread:$0]  (!%p930_p0), %s183_s7, 128, %s185_s1, %s172_s10  }
  0x24   : > { %s222_s20 = sshll.u32 %s220_s11, 4  ;;  %233 = sbr.rel (%p942_p3) target bundleno = 657 (0x291), region = 32  ;;  %s223_s20 = int_to_ptr.hbm [resolvable:$true] %s222_s20 }
  0x25   : > { %590 = dma.hbm_to_vmem [thread:$0]  (!%p930_p0), %s223_s20, 128, %s225_s26, %s192_s19  }
  0x26   : > { %s962_s1 = sshll.u32 (!%p942_p3), %s959_s22, 3  ;;  %s236_s28 = scalar_lea.sflag (!%p942_p3), [#allocation7], %s959_s22 }
  0x27   : > { %s239_s30 = scalar_lea.vmem (!%p942_p3), [#allocation6], %s962_s1 }
  0x29   : > { %800 = dma.done.wait (%p909_p8), %s236_s28, 128  }
  0x2a   : > { %802 = vsyncadd (%p909_p8), %s236_s28, 4294967168  ;;  %s245_s16 = sand.u32 1, %s889_s18   ;;  %s249_s26 = scalar_lea.vmem [#allocation9], %s962_s1 }
  0x2b   : > { %s246_s20 = scalar_lea.sflag [#allocation10], %s245_s16 }
  0x2c   : > { %804 = dma.done.wait (%p909_p8), %s246_s20, 256  }
  0x2d   : > { %806 = vsyncadd (%p909_p8), %s246_s20, 4294967040  ;;  %v297_v0 = vld [vmem:[%s239_s30] sm:$0xff]  ;;  %vm299_vm0 = vcmask 261120   ;;  %v306_v1 = vld [vmem:[%s249_s26] sm:$0xff]  ;;  %vm301_vm1 = vcmask 7168   ;;  %v835_v4 = vmov -inf  }
  0x2e   : > { %v298_v2 = vmul.f32 0.17677669, %v297_v0  ;;  %566 = vmatpush.xpose.msk.msra.mxu0 %vm299_vm0, %v306_v1  ;;  %302 = vst.msk [vmem:[#allocation3] sm:$0xff] %vm301_vm1, %v835_v4  ;;  %vm336_vm2 = vcmask 64512   ;;  %v836_v7 = vmov 0   ;;  %v837_v8 = vmov 0.0  }
  0x2f   : > { %648 = vset.pattern.permute.xlu0 %v836_v7  ;;  %649 = vset.pattern.permute.xlu1 %v836_v7  ;;  %303 = vst.msk [vmem:[#allocation4] sm:$0xff] %vm301_vm1, %v837_v8  ;;  %s259_s18 = scalar_lea.vmem [#allocation11], %s962_s1  ;;  %s570_s24 = sshll.u32 %s825_s15, 3 }
  0x30   : > { %300 = vst.msk [vmem:[#allocation2] sm:$0xff] %vm299_vm0, %v298_v2  ;;  %650 = vset.pattern.permute.xlu2 %v836_v7  ;;  %v307_v13 = vld [vmem:[%s259_s18] sm:$0xff]  ;;  %s418_s19 = scalar_lea.hbm %s1032_s3, %s570_s24  ;;  %s292_s21 = scalar_lea.vmem [#allocation12], %s962_s1 }
  0x31   : > { %304 = vst.msk [vmem:[#allocation5] sm:$0xff] %vm299_vm0, %v837_v8  ;;  %385 = vmatpush.msra.mxu1 %v307_v13  ;;  %s420_s23 = sshll.u32 %s292_s21, 4  ;;  %s422_s6 = sshll.u32 %s418_s19, 4  ;;  %s421_s23 = int_to_ptr.vmem [resolvable:$true] %s420_s23  ;;  %s423_s6 = int_to_ptr.hbm [resolvable:$true] %s422_s6 }
  0x32   : > { %s407_s7 = scalar_lea.sflag [#allocation8], %s959_s22  ;;  %s761_s8 = sshra.s32 %s423_s6, 4  ;;  %s762_s8 = int_to_ptr.hbm [resolvable:$true] %s761_s8 }
  0x33   : > { %s763_s10 = scalar_lea.hbm %s762_s8, 8  ;;  %s767_s9 = scalar_lea.hbm %s1032_s3, 16 }
  0x34   : > { %p764_p4 = scmp.ne.s32.totalorder %s762_s8, %s763_s10  ;;  %p768_p7 = scmp.lt.s32.totalorder %s762_s8, %s1032_s3 }
  0x35   : > { %v335_v9 = vld [vmem:[#allocation3] sm:$0xff]  ;;  %p769_p8 = scmp.lt.s32.totalorder %s767_s9, %s763_s10 }
  0x36   : > { %v352_v21 = vld [vmem:[#allocation4] sm:$0xff]  ;;  %p765_p5 = pnand %p764_p4, %p913_p9 }
  0x37   : > { %v305_v3 = vld [vmem:[#allocation2] sm:$0xff]  ;;  %p770_p10 = por %p769_p8, %p768_p7 }
  0x38   : > { %567 = vmatmul.msk.f32.vlgmr.msra.gmra.mxu0 %vm299_vm0, %v305_v3  ;;  %v360_v27 = vld [vmem:[#allocation5] sm:$0xff]  ;;  %p766_p6 = pneg %p765_p5 }
  0x3a   : > { %p771_p13 = pnand %p770_p10, %p766_p6 }
  0xb5   : > { %v332_v5 = vpop.f32.mrf.mxu0 }
  0xb6   : > { %v337_v6 = vsel %vm336_vm2, %v332_v5, -inf }
  0xb7   : > { %338 = vmax.xlane.f32.xlu0 %v337_v6 }
 0x12a   : > { %v339_v10 = vpop.xlane.xlu0 %338 }
 0x12b   : > { %v340_v11 = vmax.f32 %v335_v9, %v339_v10 }
 0x12d   : > { %v341_v12 = vsub.f32 %v335_v9, %v340_v11  ;;  %392 = vst.msk [vmem:[#allocation3] sm:$0xff] %vm301_vm1, %v340_v11  ;;  %346 = vperm.xlu0 %648, %v340_v11  }
 0x12f   : > { %v342_v19 = vmul.f32 1.442695, %v341_v12 }
 0x19f   : > { %v347_v14 = vpop.permute.xlu0 %346 }
 0x1a0   : > { %v349_v15 = vsub.f32 %v332_v5, %v347_v14 }
 0x1a2   : > { %v350_v16 = vmul.f32 1.442695, %v349_v15 }
 0x1a4   : > { %651 = vpow2.f32 %v350_v16 }
 0x1a5   : > { %653 = vpow2.f32 %v342_v19 }
 0x1aa   : > { %v652_v17 = vpop.eup %651 }
 0x1ab   : > { %568 = vmatmul.msk.f32.vlgmr.msra.gmra.mxu1 %vm336_vm2, %v652_v17  ;;  %v354_v18 = vsel %vm336_vm2, %v652_v17, 0.0  ;;  %v654_v20 = vpop.eup %653 }
 0x1ac   : > { %355 = vadd.xlane.f32.xlu1 %v354_v18  ;;  %v353_v22 = vmul.f32 %v654_v20, %v352_v21 }
 0x1c5   : > { %363 = vperm.xlu1 %649, %v654_v20  }
 0x21f   : > { %v356_v23 = vpop.xlane.xlu1 %355 }
 0x220   : > { %v357_v24 = vadd.f32 %v356_v23, %v353_v22 }
 0x222   : > { %359 = vst.msk [vmem:[#allocation4] sm:$0xff] %vm301_vm1, %v357_v24 }
 0x228   : > { %v387_v30 = vpop.f32.mrf.mxu1 }
 0x229   : > { %v396_v25 = vld [vmem:[#allocation4] sm:$0xff] }
 0x22a   : > { %655 = vrcp.f32 %v396_v25 }
 0x230   : > { %v656_v26 = vpop.eup %655 }
 0x231   : > { %401 = vperm.xlu2 %650, %v656_v26  }
 0x237   : > { %v364_v28 = vpop.permute.xlu1 %363 }
 0x238   : > { %v366_v29 = vmul.f32 %v364_v28, %v360_v27 }
 0x23a   : > { %v390_v31 = vadd.f32 %v387_v30, %v366_v29 }
 0x23c   : > { %391 = vst.msk [vmem:[#allocation5] sm:$0xff] %vm299_vm0, %v390_v31 }
 0x243   : > { %v398_v32 = vld [vmem:[#allocation5] sm:$0xff] }
 0x28b   : > { %v402_v33 = vpop.permute.xlu2 %401 }
 0x28c   : > { %v404_v34 = vmul.f32 %v402_v33, %v398_v32 }
 0x28e   : > { %405 = vst.msk [vmem:[%s292_s21] sm:$0xff] %vm299_vm0, %v404_v34 }
 0x28f   : > { %774 = shalt.err (!%p771_p13)
}
 0x290   : > { %579 = dma.vmem_to_hbm [thread:$0]  (%p913_p9), %s421_s23, 128, %s423_s6, %s407_s7  }
 0x291 PF: > { %s434_s22 = sand.u32 1, %s813_s12   ;;  %p592_p0 = pnand %p554_p12, %p920_p11 }
 0x292   : > { %s435_s28 = scalar_lea.sflag [#allocation8], %s434_s22 }
 0x293   : > { %p593_p1 = pneg %p592_p0 }
 0x295   : > { %808 = dma.done.wait (%p593_p1), %s435_s28, 128  }
 0x296   : > { %810 = vsyncadd (%p593_p1), %s435_s28, 4294967168  ;;  %s22_s17 = sadd.s32 1, %s833_s17   ;;  %s1046_s30 = sld [smem:[#allocation18_spill]] }
 0x297   : > { %p19_p2 = scmp.ge.s32.totalorder %s22_s17, 4   ;;  %s1047_s15 = sld [smem:[#allocation16_spill]] }
 0x298   : > { %s1048_s16 = sld [smem:[#allocation17_spill]]  ;;  %s1049_s12 = smov %s817_s13 }
 0x299   : > { %s1050_s13 = smov %s821_s14  ;;  %21 = sbr.rel (!%p19_p2) target bundleno = 10 (0xa), region = 109 }
 0x29c   : > { %s1051_s14 = smov %s1046_s30 }
 0x29e   :  { %441 = vsyncpa [#allocation7], 1 }
 0x29f   :  { %443 = vsyncpa [#allocation7 + $0x1], 1 }
 0x2a0   :  { %444 = vsyncpa [#allocation10], 1 }
 0x2a1   :  { %446 = vsyncpa [#allocation10 + $0x1], 1 }
 0x2a2   :  { %447 = vsyncpa [#allocation8], 1 }
 0x2a3   :  { %449 = vsyncpa [#allocation8 + $0x1], 1 }

</bundles_post_ra>
